<compile_context>
chip_gen: v6e
topology: v6e:2x2x1
jax: 0.10.0
libtpu: 0.0.40
codegen_flags: <defaults>
</compile_context>

<pallas_src>
import numpy as np
import jax
import jax.numpy as jnp
from jax.experimental import pallas as pl
from jax.experimental.pallas import tpu as pltpu


def _vmem_capacity_bytes():
    """Physical VMEM capacity (falls back to 128 MiB if the query fails)."""
    try:
        info = pltpu.get_tpu_info()
        cap = getattr(info, "vmem_capacity_bytes", None)
        if cap:
            return int(cap)
    except Exception:
        pass
    return 128 * 1024 * 1024


def _choose_block_rows(B, D, itemsize, vmem_budget_bytes):
    """Largest multiple-of-8 divisor of B (capped at B//2 when possible so the
    grid has >=2 row blocks for v7x megacore) whose per-step working set fits
    the VMEM budget (streamed inputs x2 buffers + f32 intermediates + scratch)."""
    if B % 8 != 0:
        # TODO(synk): pad B to a multiple of 8 (with row masking) instead of a
        # single full-batch block; matters for odd batch sizes on v7x.
        return B
    # Per-row bytes: student crop + 2 teacher chunks double-buffered, plus the
    # q-weight scratch (3x f32) and ~8 f32 (tb, D)-shaped live intermediates.
    per_row = (2 + 4) * D * itemsize + (3 + 8) * D * 4
    const = 2 * 8 * D * 4 + 2 * 8 * 128 * 4 + 2 * D * 4 + (256 << 10)
    cap = max(8, (vmem_budget_bytes - const) // per_row)
    max_t = B if B < 16 else B // 2
    best = 8
    t = 16
    while t <= min(max_t, cap):
        if B % t == 0:
            best = t
        t += 8
    return int(best)


def _make_dino_kernel(ncrops, B, tb, D, student_temp, sublane_partials):
    n_loss_terms = 2 * (ncrops - 1)
    inv_student_temp = 1.0 / float(student_temp)
    inv_norm = 1.0 / float(B * n_loss_terms)
    n_w = 3 if ncrops > 2 else 2

    def kernel(inv_temp_ref, s_ref, t_ref, c_ref, loss_ref, tsum_ref,
               qw_ref, qs_ref, acc_ref):
        v = pl.program_id(1)

        # ---------- once per row block: teacher path + init ----------
        @pl.when(v == 0)
        def _init():
            teacher = t_ref[...].astype(jnp.float32)            # (2, tb, D)

            # Teacher column-sum for the center EMA, hoisted before the softmax
            # so the raw teacher block dies early.  Per-sublane partials avoid a
            # cross-sublane reduce; the wrapper finishes the reduction.
            tsum = teacher[0] + teacher[1]                       # (tb, D)
            if sublane_partials:
                tsum_ref[...] = jnp.sum(
                    tsum.reshape(tb // 8, 8, D), axis=0, keepdims=True)
            else:
                col = jnp.sum(tsum, axis=0, keepdims=True).reshape(1, 1, D)
                tsum_ref[...] = jnp.broadcast_to(col, (1, 8, D))

            inv_teacher_temp = inv_temp_ref[0]                   # f32 from SMEM
            center = c_ref[...].astype(jnp.float32).reshape(1, 1, D)

            # softmax((teacher - center) * inv_teacher_temp, axis=-1)
            t_logits = (teacher - center) * inv_teacher_temp
            t_max = jnp.max(t_logits, axis=-1, keepdims=True)
            t_exp = jnp.exp(t_logits - t_max)
            denom = jnp.sum(t_exp, axis=-1, keepdims=True)       # (2, tb, 1)
            recip = pl.reciprocal(denom, approx=True)            # EUP
            q = t_exp * recip                                    # (2, tb, D)
            rs = denom * recip                                   # (2, tb, 1) = sum_d q

            # Effective teacher weight per student crop v (collapsed pair loop):
            #   v == 0 -> q1 ; v == 1 -> q0 ; v >= 2 -> q0 + q1
            qw_ref[0] = q[1]
            qw_ref[1] = q[0]
            qs_ref[0] = rs[1]
            qs_ref[1] = rs[0]
            if n_w == 3:
                qw_ref[2] = q[0] + q[1]
                qs_ref[2] = rs[0] + rs[1]

            acc_ref[...] = jnp.zeros_like(acc_ref)

        # ---------- per-crop student contribution ----------
        widx = jnp.minimum(v, n_w - 1)
        w = qw_ref[widx]                                         # (tb, D)
        ws = qs_ref[widx]                                        # (tb, 1)

        s_v = s_ref[0].astype(jnp.float32) * inv_student_temp    # (tb, D)
        s_max = jnp.max(s_v, axis=-1, keepdims=True)
        s_lse = jnp.log(jnp.sum(jnp.exp(s_v - s_max), axis=-1,
                                keepdims=True)) + s_max
        # sum_d(w * logp) = sum_d(w * s_v) - lse * sum_d(w)  (no logp array).
        acc_ref[...] += (jnp.sum(w * s_v, axis=-1, keepdims=True) - s_lse * ws)

        # ---------- finalize once per row block ----------
        @pl.when(v == pl.num_programs(1) - 1)
        def _finalize():
            # Partial of total_loss = (1/n_terms) * mean_b( sum_pairs(-q . logp) )
            loss_block = -jnp.sum(acc_ref[...]) * inv_norm
            loss_ref[...] = jnp.broadcast_to(
                loss_block.reshape(1, 1, 1), (1, 8, 128))

    return kernel, n_w


class DINOLossPallas:
    def __init__(self, out_dim, ncrops, warmup_teacher_temp, teacher_temp,
                 warmup_teacher_temp_epochs, nepochs,
                 student_temp=0.1, center_momentum=0.9, block_rows=None):
        self.out_dim = out_dim
        self.ncrops = ncrops
        self.student_temp = student_temp
        self.center_momentum = center_momentum
        self.block_rows = block_rows
        self.center = jnp.zeros((1, out_dim), dtype=jnp.float32)
        self.teacher_temp_schedule = np.concatenate((
            np.linspace(warmup_teacher_temp, teacher_temp,
                        warmup_teacher_temp_epochs),
            np.ones(nepochs - warmup_teacher_temp_epochs) * teacher_temp,
        ))

    def __call__(self, student_output, teacher_output, epoch):
        D = self.out_dim
        ncrops = self.ncrops
        assert ncrops >= 2
        B = teacher_output.shape[0] // 2
        assert student_output.shape == (ncrops * B, D)
        assert teacher_output.shape == (2 * B, D)
        assert D % 128 == 0, "out_dim must be a multiple of 128 (lane-aligned)"

        itemsize = np.dtype(student_output.dtype).itemsize
        vmem_cap = _vmem_capacity_bytes()
        tb = self.block_rows if self.block_rows is not None else \
            _choose_block_rows(B, D, itemsize, int(0.35 * vmem_cap))
        assert B % tb == 0 and (tb % 8 == 0 or tb == B)
        nb = B // tb
        sublane_partials = (tb % 8 == 0)

        # (ncrops, B, D) / (2, B, D): crop axis streamed on the grid, teacher
        # resident per row block.  Inputs are passed in their native dtype.
        student = student_output.reshape(ncrops, B, D)
        teacher = teacher_output.reshape(2, B, D)
        inv_temp = jnp.asarray(
            [1.0 / float(self.teacher_temp_schedule[epoch])], dtype=jnp.float32)

        kernel, n_w = _make_dino_kernel(ncrops, B, tb, D, self.student_temp,
                                        sublane_partials)

        vmem_limit = int(0.8 * vmem_cap)   # ~102 MiB on v5e/v6e, ~51 MiB on v7x

        loss_part, tsum_part = pl.pallas_call(
            kernel,
            grid=(nb, ncrops),
            out_shape=(
                jax.ShapeDtypeStruct((nb, 8, 128), jnp.float32),  # partial loss
                jax.ShapeDtypeStruct((nb, 8, D), jnp.float32),    # teacher col-sum partials
            ),
            in_specs=[
                pl.BlockSpec(memory_space=pltpu.MemorySpace.SMEM),     # 1/teacher_temp
                pl.BlockSpec((1, tb, D), lambda i, v: (v, i, 0)),      # student crop v
                pl.BlockSpec((2, tb, D), lambda i, v: (0, i, 0)),      # teacher (resident over v)
                pl.BlockSpec((1, D), lambda i, v: (0, 0)),             # center
            ],
            out_specs=(
                pl.BlockSpec((1, 8, 128), lambda i, v: (i, 0, 0)),
                pl.BlockSpec((1, 8, D), lambda i, v: (i, 0, 0)),
            ),
            scratch_shapes=[
                pltpu.VMEM((n_w, tb, D), jnp.float32),   # teacher weights [q1,q0,(q0+q1)]
                pltpu.VMEM((n_w, tb, 1), jnp.float32),   # exact row sums of the weights
                pltpu.VMEM((tb, 1), jnp.float32),        # per-row loss accumulator
            ],
            compiler_params=pltpu.CompilerParams(
                dimension_semantics=("parallel", "arbitrary"),
                vmem_limit_bytes=vmem_limit),
        )(inv_temp, student, teacher, self.center)

        # Tiny cross-block reductions + center EMA in plain JAX.
        total_loss = jnp.sum(loss_part[:, 0, 0])
        # TODO(synk): dist.all_reduce over devices not implemented (world_size == 1).
        if sublane_partials:
            batch_center = jnp.sum(tsum_part, axis=(0, 1))
        else:
            batch_center = jnp.sum(tsum_part[:, 0, :], axis=0)
        batch_center = batch_center.reshape(1, D) / (2.0 * B)
        # NOTE: Python-side state update; do not wrap __call__ in jax.jit.
        self.center = (self.center * self.center_momentum
                       + batch_center * (1.0 - self.center_momentum))
        return total_loss


def _reference(student, teacher, center, temp, student_temp, ncrops,
               center_momentum):
    """Pure-JAX reference mirroring the PyTorch forward (world_size == 1)."""
    s = student / student_temp
    s_chunks = jnp.split(s, ncrops)
    q_all = jax.nn.softmax((teacher - center) / temp, axis=-1)
    q_chunks = jnp.split(q_all, 2)
    total, n = 0.0, 0
    for iq, q in enumerate(q_chunks):
        for v in range(ncrops):
            if v == iq:
                continue
            loss = jnp.sum(-q * jax.nn.log_softmax(s_chunks[v], axis=-1), axis=-1)
            total = total + loss.mean()
            n += 1
    total = total / n
    batch_center = jnp.sum(teacher, axis=0, keepdims=True) / teacher.shape[0]
    new_center = center * center_momentum + batch_center * (1 - center_momentum)
    return total, new_center


if __name__ == "__main__":
    out_dim = 128      # lane-aligned feature dim
    ncrops = 4
    B = 32             # per-crop batch size
    epoch = 3

    key = jax.random.PRNGKey(0)
    k1, k2 = jax.random.split(key)
    student_output = jax.random.normal(k1, (ncrops * B, out_dim), dtype=jnp.float32)
    teacher_output = jax.random.normal(k2, (2 * B, out_dim), dtype=jnp.float32)

    dino = DINOLossPallas(out_dim=out_dim, ncrops=ncrops,
                          warmup_teacher_temp=0.04, teacher_temp=0.07,
                          warmup_teacher_temp_epochs=5, nepochs=10,
                          block_rows=8)   # 4 row blocks x 4 crops -> 16 grid steps

    loss = dino(student_output, teacher_output, epoch)
    loss = jax.block_until_ready(loss)
    new_center = jax.block_until_ready(dino.center)

    # Sanity check against a pure-JAX reference.  The teacher-softmax uses the
    # EUP approx reciprocal (~2^-12 relative error), so the loss check uses a
    # slightly looser tolerance; the center path is exact-ish.
    ref_loss, ref_center = _reference(
        student_output, teacher_output, jnp.zeros((1, out_dim), jnp.float32),
        float(dino.teacher_temp_schedule[epoch]), dino.student_temp,
        ncrops, dino.center_momentum)
    assert np.allclose(np.asarray(loss), np.asarray(ref_loss),
                       rtol=2e-3, atol=2e-3), (loss, ref_loss)
    assert np.allclose(np.asarray(new_center), np.asarray(ref_center),
                       rtol=1e-4, atol=1e-5)

    print("KERNEL_OK")
</pallas_src>

<mosaic_0001>
module attributes {stable_mosaic.version = 11 : i64} {
  func.func @kernel(%arg0: i32, %arg1: i32, %arg2: memref<1xf32, #tpu.memory_space<smem>>, %arg3: memref<1x8x128xf32, #tpu.memory_space<vmem>>, %arg4: memref<2x8x128xf32, #tpu.memory_space<vmem>>, %arg5: memref<1x128xf32, #tpu.memory_space<vmem>>, %arg6: memref<1x8x128xf32, #tpu.memory_space<vmem>>, %arg7: memref<1x8x128xf32, #tpu.memory_space<vmem>>, %arg8: memref<3x8x128xf32, #tpu.memory_space<vmem>>, %arg9: memref<3x8x1xf32, #tpu.memory_space<vmem>>, %arg10: memref<8x1xf32, #tpu.memory_space<vmem>>) attributes {dimension_semantics = [#tpu.dimension_semantics<parallel>, #tpu.dimension_semantics<arbitrary>], iteration_bounds = array<i64: 4, 4>, scalar_prefetch = 0 : i64, scratch_operands = 3 : i64, tpu.core_type = #tpu.core_type<tc>, window_params = [{transform_indices = @transform_0, window_bounds = array<i64: 1>}, {transform_indices = @transform_1, window_bounds = array<i64: 1, 8, 128>}, {transform_indices = @transform_2, window_bounds = array<i64: 2, 8, 128>}, {pipeline_mode = #tpu.pipeline_mode<synchronous>, transform_indices = @transform_3, window_bounds = array<i64: 1, 128>}, {transform_indices = @transform_4, window_bounds = array<i64: 1, 8, 128>}, {transform_indices = @transform_5, window_bounds = array<i64: 1, 8, 128>}]} {
    %c0_i32 = arith.constant 0 : i32
    %0 = arith.cmpi eq, %arg1, %c0_i32 : i32
    %1 = arith.extui %0 : i1 to i32
    %c0_i32_0 = arith.constant 0 : i32
    %2 = arith.cmpi ne, %1, %c0_i32_0 : i32
    scf.if %2 {
      %c0_15 = arith.constant 0 : index
      %c0_16 = arith.constant 0 : index
      %c0_17 = arith.constant 0 : index
      %34 = vector.load %arg4[%c0_15, %c0_16, %c0_17] : memref<2x8x128xf32, #tpu.memory_space<vmem>>, vector<2x8x128xf32>
      %35 = vector.extract_strided_slice %34 {offsets = [0, 0, 0], sizes = [1, 8, 128], strides = [1, 1, 1]} : vector<2x8x128xf32> to vector<1x8x128xf32>
      %36 = vector.shape_cast %35 : vector<1x8x128xf32> to vector<8x128xf32>
      %37 = vector.extract_strided_slice %34 {offsets = [1, 0, 0], sizes = [1, 8, 128], strides = [1, 1, 1]} : vector<2x8x128xf32> to vector<1x8x128xf32>
      %38 = vector.shape_cast %37 : vector<1x8x128xf32> to vector<8x128xf32>
      %39 = arith.addf %36, %38 : vector<8x128xf32>
      %40 = vector.shape_cast %39 : vector<8x128xf32> to vector<1x8x128xf32>
      %cst_18 = arith.constant dense<0.000000e+00> : vector<8x128xf32>
      %41 = vector.multi_reduction <add>, %40, %cst_18 [0] : vector<1x8x128xf32> to vector<8x128xf32>
      %42 = vector.shape_cast %41 : vector<8x128xf32> to vector<1x8x128xf32>
      %c0_19 = arith.constant 0 : index
      %c0_20 = arith.constant 0 : index
      %c0_21 = arith.constant 0 : index
      %43 = vector.load %arg7[%c0_19, %c0_20, %c0_21] : memref<1x8x128xf32, #tpu.memory_space<vmem>>, vector<1x8x128xf32>
      tpu.vector_store %arg7[%c0_19, %c0_20, %c0_21], %42 {strides = array<i32>} : memref<1x8x128xf32, #tpu.memory_space<vmem>>, vector<1x8x128xf32>,
      %c0_22 = arith.constant 0 : index
      %44 = memref.load %arg2[%c0_22] : memref<1xf32, #tpu.memory_space<smem>>
      %c0_23 = arith.constant 0 : index
      %c0_24 = arith.constant 0 : index
      %45 = vector.load %arg5[%c0_23, %c0_24] : memref<1x128xf32, #tpu.memory_space<vmem>>, vector<1x128xf32>
      %46 = vector.shape_cast %45 : vector<1x128xf32> to vector<1x1x128xf32>
      %47 = vector.broadcast %46 : vector<1x1x128xf32> to vector<2x8x128xf32>
      %48 = arith.subf %34, %47 : vector<2x8x128xf32>
      %49 = vector.broadcast %44 : f32 to vector<2x8x128xf32>
      %50 = arith.mulf %48, %49 : vector<2x8x128xf32>
      %cst_25 = arith.constant dense<0xFF800000> : vector<2x8xf32>
      %51 = vector.multi_reduction <maximumf>, %50, %cst_25 [2] : vector<2x8x128xf32> to vector<2x8xf32>
      %52 = vector.shape_cast %51 : vector<2x8xf32> to vector<2x8x1xf32>
      %53 = vector.broadcast %52 : vector<2x8x1xf32> to vector<2x8x128xf32>
      %54 = arith.subf %50, %53 : vector<2x8x128xf32>
      %55 = math.exp %54 : vector<2x8x128xf32>
      %cst_26 = arith.constant dense<0.000000e+00> : vector<2x8xf32>
      %56 = vector.multi_reduction <add>, %55, %cst_26 [2] : vector<2x8x128xf32> to vector<2x8xf32>
      %57 = vector.shape_cast %56 : vector<2x8xf32> to vector<2x8x1xf32>
      %58 = tpu.reciprocal %57 {approx = true} : vector<2x8x1xf32> -> vector<2x8x1xf32>
      %59 = vector.broadcast %58 : vector<2x8x1xf32> to vector<2x8x128xf32>
      %60 = arith.mulf %55, %59 : vector<2x8x128xf32>
      %61 = arith.mulf %57, %58 : vector<2x8x1xf32>
      %62 = vector.extract_strided_slice %60 {offsets = [1, 0, 0], sizes = [1, 8, 128], strides = [1, 1, 1]} : vector<2x8x128xf32> to vector<1x8x128xf32>
      %63 = vector.shape_cast %62 : vector<1x8x128xf32> to vector<8x128xf32>
      %c0_27 = arith.constant 0 : index
      %c0_28 = arith.constant 0 : index
      %c0_29 = arith.constant 0 : index
      %64 = vector.load %arg8[%c0_27, %c0_28, %c0_29] : memref<3x8x128xf32, #tpu.memory_space<vmem>>, vector<1x8x128xf32>
      %65 = vector.shape_cast %64 : vector<1x8x128xf32> to vector<8x128xf32>
      %66 = vector.shape_cast %63 : vector<8x128xf32> to vector<1x8x128xf32>
      tpu.vector_store %arg8[%c0_27, %c0_28, %c0_29], %66 {strides = array<i32>} : memref<3x8x128xf32, #tpu.memory_space<vmem>>, vector<1x8x128xf32>,
      %67 = vector.extract_strided_slice %60 {offsets = [0, 0, 0], sizes = [1, 8, 128], strides = [1, 1, 1]} : vector<2x8x128xf32> to vector<1x8x128xf32>
      %68 = vector.shape_cast %67 : vector<1x8x128xf32> to vector<8x128xf32>
      %c1 = arith.constant 1 : index
      %c0_30 = arith.constant 0 : index
      %c0_31 = arith.constant 0 : index
      %69 = vector.load %arg8[%c1, %c0_30, %c0_31] : memref<3x8x128xf32, #tpu.memory_space<vmem>>, vector<1x8x128xf32>
      %70 = vector.shape_cast %69 : vector<1x8x128xf32> to vector<8x128xf32>
      %71 = vector.shape_cast %68 : vector<8x128xf32> to vector<1x8x128xf32>
      tpu.vector_store %arg8[%c1, %c0_30, %c0_31], %71 {strides = array<i32>} : memref<3x8x128xf32, #tpu.memory_space<vmem>>, vector<1x8x128xf32>,
      %72 = vector.extract_strided_slice %61 {offsets = [1, 0, 0], sizes = [1, 8, 1], strides = [1, 1, 1]} : vector<2x8x1xf32> to vector<1x8x1xf32>
      %73 = vector.shape_cast %72 : vector<1x8x1xf32> to vector<8x1xf32>
      %c0_32 = arith.constant 0 : index
      %c0_33 = arith.constant 0 : index
      %c0_34 = arith.constant 0 : index
      %74 = vector.load %arg9[%c0_32, %c0_33, %c0_34] : memref<3x8x1xf32, #tpu.memory_space<vmem>>, vector<1x8x1xf32>
      %75 = vector.shape_cast %74 : vector<1x8x1xf32> to vector<8x1xf32>
      %76 = vector.shape_cast %73 : vector<8x1xf32> to vector<1x8x1xf32>
      tpu.vector_store %arg9[%c0_32, %c0_33, %c0_34], %76 {strides = array<i32>} : memref<3x8x1xf32, #tpu.memory_space<vmem>>, vector<1x8x1xf32>,
      %77 = vector.extract_strided_slice %61 {offsets = [0, 0, 0], sizes = [1, 8, 1], strides = [1, 1, 1]} : vector<2x8x1xf32> to vector<1x8x1xf32>
      %78 = vector.shape_cast %77 : vector<1x8x1xf32> to vector<8x1xf32>
      %c1_35 = arith.constant 1 : index
      %c0_36 = arith.constant 0 : index
      %c0_37 = arith.constant 0 : index
      %79 = vector.load %arg9[%c1_35, %c0_36, %c0_37] : memref<3x8x1xf32, #tpu.memory_space<vmem>>, vector<1x8x1xf32>
      %80 = vector.shape_cast %79 : vector<1x8x1xf32> to vector<8x1xf32>
      %81 = vector.shape_cast %78 : vector<8x1xf32> to vector<1x8x1xf32>
      tpu.vector_store %arg9[%c1_35, %c0_36, %c0_37], %81 {strides = array<i32>} : memref<3x8x1xf32, #tpu.memory_space<vmem>>, vector<1x8x1xf32>,
      %82 = vector.extract_strided_slice %60 {offsets = [0, 0, 0], sizes = [1, 8, 128], strides = [1, 1, 1]} : vector<2x8x128xf32> to vector<1x8x128xf32>
      %83 = vector.shape_cast %82 : vector<1x8x128xf32> to vector<8x128xf32>
      %84 = vector.extract_strided_slice %60 {offsets = [1, 0, 0], sizes = [1, 8, 128], strides = [1, 1, 1]} : vector<2x8x128xf32> to vector<1x8x128xf32>
      %85 = vector.shape_cast %84 : vector<1x8x128xf32> to vector<8x128xf32>
      %86 = arith.addf %83, %85 : vector<8x128xf32>
      %c2 = arith.constant 2 : index
      %c0_38 = arith.constant 0 : index
      %c0_39 = arith.constant 0 : index
      %87 = vector.load %arg8[%c2, %c0_38, %c0_39] : memref<3x8x128xf32, #tpu.memory_space<vmem>>, vector<1x8x128xf32>
      %88 = vector.shape_cast %87 : vector<1x8x128xf32> to vector<8x128xf32>
      %89 = vector.shape_cast %86 : vector<8x128xf32> to vector<1x8x128xf32>
      tpu.vector_store %arg8[%c2, %c0_38, %c0_39], %89 {strides = array<i32>} : memref<3x8x128xf32, #tpu.memory_space<vmem>>, vector<1x8x128xf32>,
      %90 = vector.extract_strided_slice %61 {offsets = [0, 0, 0], sizes = [1, 8, 1], strides = [1, 1, 1]} : vector<2x8x1xf32> to vector<1x8x1xf32>
      %91 = vector.shape_cast %90 : vector<1x8x1xf32> to vector<8x1xf32>
      %92 = vector.extract_strided_slice %61 {offsets = [1, 0, 0], sizes = [1, 8, 1], strides = [1, 1, 1]} : vector<2x8x1xf32> to vector<1x8x1xf32>
      %93 = vector.shape_cast %92 : vector<1x8x1xf32> to vector<8x1xf32>
      %94 = arith.addf %91, %93 : vector<8x1xf32>
      %c2_40 = arith.constant 2 : index
      %c0_41 = arith.constant 0 : index
      %c0_42 = arith.constant 0 : index
      %95 = vector.load %arg9[%c2_40, %c0_41, %c0_42] : memref<3x8x1xf32, #tpu.memory_space<vmem>>, vector<1x8x1xf32>
      %96 = vector.shape_cast %95 : vector<1x8x1xf32> to vector<8x1xf32>
      %97 = vector.shape_cast %94 : vector<8x1xf32> to vector<1x8x1xf32>
      tpu.vector_store %arg9[%c2_40, %c0_41, %c0_42], %97 {strides = array<i32>} : memref<3x8x1xf32, #tpu.memory_space<vmem>>, vector<1x8x1xf32>,
      %cst_43 = arith.constant 0.000000e+00 : f32
      %98 = vector.broadcast %cst_43 : f32 to vector<8x1xf32>
      %c0_44 = arith.constant 0 : index
      %c0_45 = arith.constant 0 : index
      %99 = vector.load %arg10[%c0_44, %c0_45] : memref<8x1xf32, #tpu.memory_space<vmem>>, vector<8x1xf32>
      tpu.vector_store %arg10[%c0_44, %c0_45], %98 {strides = array<i32>} : memref<8x1xf32, #tpu.memory_space<vmem>>, vector<8x1xf32>,
    } else {
    }
    %c2_i32 = arith.constant 2 : i32
    %3 = arith.minsi %arg1, %c2_i32 : i32
    %4 = arith.index_cast %3 : i32 to index
    %c0 = arith.constant 0 : index
    %c0_1 = arith.constant 0 : index
    %5 = vector.load %arg8[%4, %c0, %c0_1] : memref<3x8x128xf32, #tpu.memory_space<vmem>>, vector<1x8x128xf32>
    %6 = vector.shape_cast %5 : vector<1x8x128xf32> to vector<8x128xf32>
    %7 = arith.index_cast %3 : i32 to index
    %c0_2 = arith.constant 0 : index
    %c0_3 = arith.constant 0 : index
    %8 = vector.load %arg9[%7, %c0_2, %c0_3] : memref<3x8x1xf32, #tpu.memory_space<vmem>>, vector<1x8x1xf32>
    %9 = vector.shape_cast %8 : vector<1x8x1xf32> to vector<8x1xf32>
    %c0_4 = arith.constant 0 : index
    %c0_5 = arith.constant 0 : index
    %c0_6 = arith.constant 0 : index
    %10 = vector.load %arg3[%c0_4, %c0_5, %c0_6] : memref<1x8x128xf32, #tpu.memory_space<vmem>>, vector<1x8x128xf32>
    %11 = vector.shape_cast %10 : vector<1x8x128xf32> to vector<8x128xf32>
    %cst = arith.constant 1.000000e+01 : f32
    %12 = vector.broadcast %cst : f32 to vector<8x128xf32>
    %13 = arith.mulf %11, %12 : vector<8x128xf32>
    %cst_7 = arith.constant dense<0xFF800000> : vector<8xf32>
    %14 = vector.multi_reduction <maximumf>, %13, %cst_7 [1] : vector<8x128xf32> to vector<8xf32>
    %15 = vector.shape_cast %14 : vector<8xf32> to vector<8x1xf32>
    %16 = vector.broadcast %15 : vector<8x1xf32> to vector<8x128xf32>
    %17 = arith.subf %13, %16 : vector<8x128xf32>
    %18 = math.exp %17 : vector<8x128xf32>
    %cst_8 = arith.constant dense<0.000000e+00> : vector<8xf32>
    %19 = vector.multi_reduction <add>, %18, %cst_8 [1] : vector<8x128xf32> to vector<8xf32>
    %20 = vector.shape_cast %19 : vector<8xf32> to vector<8x1xf32>
    %21 = math.log %20 : vector<8x1xf32>
    %22 = arith.addf %21, %15 : vector<8x1xf32>
    %c0_9 = arith.constant 0 : index
    %c0_10 = arith.constant 0 : index
    %23 = vector.load %arg10[%c0_9, %c0_10] : memref<8x1xf32, #tpu.memory_space<vmem>>, vector<8x1xf32>
    %24 = arith.mulf %6, %13 : vector<8x128xf32>
    %cst_11 = arith.constant dense<0.000000e+00> : vector<8xf32>
    %25 = vector.multi_reduction <add>, %24, %cst_11 [1] : vector<8x128xf32> to vector<8xf32>
    %26 = vector.shape_cast %25 : vector<8xf32> to vector<8x1xf32>
    %27 = arith.mulf %22, %9 : vector<8x1xf32>
    %28 = arith.subf %26, %27 : vector<8x1xf32>
    %29 = arith.addf %23, %28 : vector<8x1xf32>
    %c0_12 = arith.constant 0 : index
    %c0_13 = arith.constant 0 : index
    %30 = vector.load %arg10[%c0_12, %c0_13] : memref<8x1xf32, #tpu.memory_space<vmem>>, vector<8x1xf32>
    tpu.vector_store %arg10[%c0_12, %c0_13], %29 {strides = array<i32>} : memref<8x1xf32, #tpu.memory_space<vmem>>, vector<8x1xf32>,
    %c3_i32 = arith.constant 3 : i32
    %31 = arith.cmpi eq, %arg1, %c3_i32 : i32
    %32 = arith.extui %31 : i1 to i32
    %c0_i32_14 = arith.constant 0 : i32
    %33 = arith.cmpi ne, %32, %c0_i32_14 : i32
    scf.if %33 {
      %c0_15 = arith.constant 0 : index
      %c0_16 = arith.constant 0 : index
      %34 = vector.load %arg10[%c0_15, %c0_16] : memref<8x1xf32, #tpu.memory_space<vmem>>, vector<8x1xf32>
      %35 = vector.shape_cast %34 : vector<8x1xf32> to vector<1x8x1xf32>
      %cst_17 = arith.constant dense<0.000000e+00> : vector<1xf32>
      %36 = vector.multi_reduction <add>, %35, %cst_17 [1, 2] : vector<1x8x1xf32> to vector<1xf32>
      %37 = vector.shape_cast %36 : vector<1xf32> to vector<1x1x1xf32>
      %38 = vector.extract %37[0, 0, 0] : f32 from vector<1x1x1xf32>
      %cst_18 = arith.constant 0.000000e+00 : f32
      %39 = arith.subf %cst_18, %38 : f32
      %cst_19 = arith.constant 0.00520833349 : f32
      %40 = arith.mulf %39, %cst_19 : f32
      %41 = vector.broadcast %40 : f32 to vector<1x1x1xf32>
      %42 = vector.shape_cast %41 : vector<1x1x1xf32> to vector<1x1x1xf32>
      %43 = vector.broadcast %42 : vector<1x1x1xf32> to vector<1x8x128xf32>
      %c0_20 = arith.constant 0 : index
      %c0_21 = arith.constant 0 : index
      %c0_22 = arith.constant 0 : index
      %44 = vector.load %arg6[%c0_20, %c0_21, %c0_22] : memref<1x8x128xf32, #tpu.memory_space<vmem>>, vector<1x8x128xf32>
      tpu.vector_store %arg6[%c0_20, %c0_21, %c0_22], %43 {strides = array<i32>} : memref<1x8x128xf32, #tpu.memory_space<vmem>>, vector<1x8x128xf32>,
    } else {
    }
    return
  }
  func.func @transform_0(%arg0: i32, %arg1: i32) -> i32 {
    %c0_i32 = arith.constant 0 : i32
    %c0_i32_0 = arith.constant 0 : i32
    return %c0_i32 : i32
  }
  func.func @transform_1(%arg0: i32, %arg1: i32) -> (i32, i32, i32) {
    %c0_i32 = arith.constant 0 : i32
    %c0_i32_0 = arith.constant 0 : i32
    return %arg1, %arg0, %c0_i32 : i32, i32, i32
  }
  func.func @transform_2(%arg0: i32, %arg1: i32) -> (i32, i32, i32) {
    %c0_i32 = arith.constant 0 : i32
    %c0_i32_0 = arith.constant 0 : i32
    %c0_i32_1 = arith.constant 0 : i32
    return %c0_i32, %arg0, %c0_i32_0 : i32, i32, i32
  }
  func.func @transform_3(%arg0: i32, %arg1: i32) -> (i32, i32) {
    %c0_i32 = arith.constant 0 : i32
    %c0_i32_0 = arith.constant 0 : i32
    %c0_i32_1 = arith.constant 0 : i32
    return %c0_i32, %c0_i32_0 : i32, i32
  }
  func.func @transform_4(%arg0: i32, %arg1: i32) -> (i32, i32, i32) {
    %c0_i32 = arith.constant 0 : i32
    %c0_i32_0 = arith.constant 0 : i32
    %c0_i32_1 = arith.constant 0 : i32
    return %arg0, %c0_i32, %c0_i32_0 : i32, i32, i32
  }
  func.func @transform_5(%arg0: i32, %arg1: i32) -> (i32, i32, i32) {
    %c0_i32 = arith.constant 0 : i32
    %c0_i32_0 = arith.constant 0 : i32
    %c0_i32_1 = arith.constant 0 : i32
    return %arg0, %c0_i32, %c0_i32_0 : i32, i32, i32
  }
}

</mosaic_0001>

<bundles_post_ra>
// kernel: tpu_custom_call.1
= control target key start
LH: loop header
LB: loop body
LE: loop exit
PB: predicated region body
PF: predicated region fallthrough
CT: control target
= control target key end

     0   :  { %s1266_s0 = inlined_call_operand.<no memory space> [shape: f32[1], index: 0, kind: input, shape index: {}]   ;;  %s1267_s1 = inlined_call_operand.hbm [shape: f32[4,32,128], index: 1, kind: input, shape index: {}]   ;;  %s1268_s2 = inlined_call_operand.hbm [shape: f32[2,32,128], index: 2, kind: input, shape index: {}]   ;;  %s1269_s3 = inlined_call_operand.vmem [shape: f32[1,128], index: 3, kind: input, shape index: {}]   ;;  %s1270_s4 = inlined_call_operand.hbm [shape: f32[4,8,128], index: 4, kind: output, shape index: {0}]   ;;  %s1271_s5 = inlined_call_operand.hbm [shape: f32[4,8,128], index: 5, kind: output, shape index: {1}]  }
   0x1   :  { %1278 = sst [smem:[#allocation24_spill]] %s1267_s1 }
   0x2   :  { %11 = sst [smem:[#allocation5]] %s1266_s0 }
   0x3   :  { %12 = vsyncpa [#allocation7], 0 }
   0x4   :  { %14 = vsyncpa [#allocation7 + $0x1], 0 }
   0x5   :  { %15 = vsyncpa [#allocation10], 0 }
   0x6   :  { %17 = vsyncpa [#allocation10 + $0x1], 0 }
   0x7   :  { %18 = vsyncpa [#allocation8], 0 }
   0x8   :  { %20 = vsyncpa [#allocation8 + $0x1], 0 }
   0x9   :  { %21 = vsyncpa [#allocation13], 0 }
   0xa   :  { %23 = vsyncpa [#allocation13 + $0x1], 0  ;;  %s991_s20 = smov 0   ;;  %s993_s21 = smov 0  }
   0xb   :  { %s995_s22 = smov 0   ;;  %s997_s23 = smov 0  }
   0xc   :  { %s999_s24 = smov 0   ;;  %s1001_s25 = smov 0  }
   0xd   :  { %s1003_s0 = smov 0   ;;  %s1005_s26 = smov 0  }
   0xe   :  { %s1007_s27 = smov 0   ;;  %s1009_s28 = smov 0  }
   0xf   :  { %s1011_s29 = smov 0  }
  0x10 LB: > { %1279 = sst [smem:[#allocation18_spill]] %s908_s20  ;;  %s584_s30 = sadd.s32 4294967295, %s948_s29   ;;  %s948_s29 = sphi %s1011_s29, %s29_s29   ;;  %s944_s28 = sphi %s1009_s28, %s1313_s28   ;;  %s940_s27 = sphi %s1007_s27, %s1312_s27   ;;  %s936_s26 = sphi %s1005_s26, %s1311_s26   ;;  %s932_s0 = sphi %s1003_s0, %s1310_s0   ;;  %s928_s25 = sphi %s1001_s25, %s1302_s25   ;;  %s924_s24 = sphi %s999_s24, %s1309_s24   ;;  %s920_s23 = sphi %s997_s23, %s1308_s23   ;;  %s916_s22 = sphi %s995_s22, %s1307_s22   ;;  %s912_s21 = sphi %s993_s21, %s1306_s21   ;;  %s908_s20 = sphi %s991_s20, %s1305_s20  }
  0x11   : > { %1280 = sst [smem:[#allocation19_spill]] %s928_s25  ;;  %s585_s6 = sadd.s32 4294967294, %s948_s29  }
  0x12   : > { %s38_s7 = sadd.s32 1, %s940_s27  ;;  %s41_s8 = sadd.s32 1, %s944_s28 }
  0x13   : > { %p39_p0 = scmp.ge.s32.totalorder %s38_s7, 4  ;;  %s71_s9 = sadd.s32 1, %s928_s25 }
  0x14   : > { %p78_p1 = scmp.ne.s32.totalorder %s928_s25, %s924_s24  ;;  %p79_p2 = scmp.eq.s32.totalorder %s948_s29, 0 }
  0x15   : > { %s1315_s7 = smov (%p39_p0, %s38_s7), 0  ;;  %s1317_s8 = smov (!%p39_p0, %s41_s8), %s944_s28 }
  0x16   : > { %1281 = sst [smem:[#allocation20_spill]] %s1315_s7  ;;  %s66_s10 = ssub.s32 %s940_s27, %s1315_s7 }
  0x17   : > { %p1059_p3 = por %p79_p2, %p78_p1  ;;  %p43_p4 = scmp.ge.s32.totalorder %s1317_s8, 4 }
  0x18   : > { %p84_p5 = scmp.ne.s32.totalorder %s924_s24, %s920_s23  ;;  %p1064_p6 = scmp.eq.s32.totalorder %s584_s30, 0 }
  0x19   : > { %s97_s13 = sadd.s32 1, %s916_s22  ;;  %s1319_s8 = smov (%p43_p4, %s1317_s8), 0 }
  0x1a   : > { %1284 = sst [smem:[#allocation21_spill]] %s1319_s8  ;;  %p1073_p7 = por %p1064_p6, %p84_p5 }
  0x1b   : > { %p104_p8 = scmp.ne.s32.totalorder %s916_s22, %s912_s21  ;;  %s67_s15 = ssub.s32 %s944_s28, %s1319_s8 }
  0x1c   : > { %p110_p9 = scmp.ne.s32.totalorder %s912_s21, %s908_s20  ;;  %s68_s16 = sor.u32 %s67_s15, %s66_s10 }
  0x1d   : > { %p95_p10 = scmp.eq.s32.totalorder %s67_s15, 0  ;;  %p69_p11 = scmp.eq.s32.totalorder %s68_s16, 0 }
  0x1e   : > { %p1085_p12 = por %p104_p8, %p79_p2  ;;  %p1097_p13 = por %p110_p9, %p1064_p6 }
  0x1f   : > { %s1090_s18 = scalar_select %p95_p10, %s916_s22, %s97_s13  }
  0x20   : > { %s1093_s19 = scalar_select %p69_p11, %s928_s25, %s71_s9  }
  0x21   : > { %1287 = sst [smem:[#allocation22_spill]] %s1090_s18  ;;  %p155_p0 = scmp.eq.s32.totalorder %s584_s30, 15 }
  0x22   : > { %1288 = sst [smem:[#allocation23_spill]] %s1093_s19  ;;  %p161_p1 = scmp.eq.s32.totalorder %s585_s6, 15 }
  0x23   : > { %s1289_s23 = scalar_select %p1097_p13, 1, 0 }
  0x24   : > { %p1101_p4 = por %p155_p0, %p104_p8  ;;  %p632_p2 = scmp.lt.s32.totalorder %s948_s29, 16 }
  0x25   : > { %p1106_p5 = por %p161_p1, %p110_p9  ;;  %s213_s9 = sand.u32 1, %s928_s25  }
  0x26   : > { %s1290_s10 = scalar_select %p1101_p4, 1, 0 }
  0x27   : > { %s1291_s13 = scalar_select %p1106_p5, 1, 0 }
  0x28   : > { %s588_s12 = sshll.u32 %s213_s9, 3  ;;  %s589_s15 = sshll.u32 %s940_s27, 2 }
  0x29   : > { %s222_s16 = sadd.s32 %s944_s28, %s589_s15  ;;  %s217_s8 = scalar_lea.vmem [#allocation6], %s588_s12 }
  0x2a   : > { %s226_s7 = sshll.u32 %s217_s8, 4  ;;  %s590_s19 = sshll.u32 %s222_s16, 7  ;;  %s227_s7 = int_to_ptr.vmem [resolvable:$true] %s226_s7 }
  0x2b   : > { %s1292_s1 = sld [smem:[#allocation24_spill]]  ;;  %p1118_p6 = pnand %p632_p2, %p1059_p3 }
  0x2c   : > { %p1124_p8 = pnand %p632_p2, %p1085_p12  ;;  %p593_p9 = scmp.ge.s32.totalorder %s948_s29, 1 }
  0x2d   : > { %p251_p10 = scmp.lt.s32.totalorder %s948_s29, 17  ;;  %s214_s8 = scalar_lea.sflag [#allocation7], %s213_s9 }
  0x2e   : > { %p740_p11 = pneg %p1118_p6  ;;  %s751_s12 = scalar_lea.vmem %s227_s7, 128 }
  0x2f   : > { %p752_p0 = scmp.ne.s32.totalorder %s227_s7, %s751_s12  ;;  %s950_s11 = smov [#allocation6]  }
  0x31   : > { %s224_s18 = scalar_lea.hbm %s1292_s1, %s590_s19  ;;  %p754_p1 = pnand %p752_p0, %p740_p11 }
  0x32   : > { %s756_s19 = sshll.u32 %s950_s11, 4  ;;  %s757_s19 = int_to_ptr.vmem [resolvable:$false] %s756_s19 }
  0x33   : > { %p755_p5 = pneg %p754_p1  ;;  %s758_s15 = scalar_lea.vmem %s757_s19, 256 }
  0x34   : > { %p759_p3 = scmp.lt.s32.totalorder %s227_s7, %s757_s19  ;;  %p760_p4 = scmp.lt.s32.totalorder %s758_s15, %s751_s12 }
  0x36   : > { %p761_p13 = por %p760_p4, %p759_p3 }
  0x38   : > { %p762_p12 = pnand %p761_p13, %p755_p5 }
  0x3a   : > { %765 = shalt.err (!%p762_p12)
}
  0x3b   : > { %621 = dma.hbm_to_vmem [thread:$0]  (!%p1118_p6), %s224_s18, 128, %s227_s7, %s214_s8  }
  0x3c   : > { %p1138_p2 = pnand %p593_p9, %p251_p10  ;;  %s233_s9 = sand.u32 1, %s916_s22  }
  0x3d   : > { %s592_s16 = sshll.u32 %s944_s28, 7  ;;  %s591_s30 = sshll.u32 %s233_s9, 4 }
  0x3e   : > { %s242_s11 = scalar_lea.hbm %s1268_s2, %s592_s16  ;;  %s237_s20 = scalar_lea.vmem [#allocation9], %s591_s30 }
  0x3f   : > { %s243_s19 = sshll.u32 %s237_s20, 4  ;;  %s234_s15 = scalar_lea.sflag [#allocation10], %s233_s9  ;;  %s244_s19 = int_to_ptr.vmem [resolvable:$true] %s243_s19 }
  0x40   : > { %p768_p13 = pneg %p1124_p8  ;;  %s779_s7 = scalar_lea.vmem %s244_s19, 256 }
  0x41   : > { %p780_p4 = scmp.ne.s32.totalorder %s244_s19, %s779_s7  ;;  %s951_s18 = smov [#allocation9]  }
  0x42   : > { %s784_s8 = sshll.u32 %s951_s18, 4  ;;  %s785_s8 = int_to_ptr.vmem [resolvable:$false] %s784_s8 }
  0x43   : > { %p782_p5 = pnand %p780_p4, %p768_p13  ;;  %s786_s1 = scalar_lea.vmem %s785_s8, 512 }
  0x44   : > { %p787_p9 = scmp.lt.s32.totalorder %s244_s19, %s785_s8  ;;  %p788_p10 = scmp.lt.s32.totalorder %s786_s1, %s779_s7 }
  0x45   : > { %p783_p6 = pneg %p782_p5 }
  0x46   : > { %p789_p11 = por %p788_p10, %p787_p9 }
  0x48   : > { %p790_p0 = pnand %p789_p11, %p783_p6 }
  0x4a   : > { %793 = shalt.err (!%p790_p0)
}
  0x4b   : > { %s952_s16 = smov 512   ;;  %s953_s30 = smov 128  }
  0x4c   : > { %s954_s6 = smov 8   ;;  %255 = sbr.rel (%p1138_p2) target bundleno = 998 (0x3e6), region = 36 }
  0x4d   : > { %624 = dma.hbm_to_vmem [thread:$0]  (!%p1124_p8), %s242_s11, 256, %s244_s19, %s234_s15, %s952_s16, %s953_s30, %s954_s6  }
  0x4e   : > { %s257_s9 = sand.u32 (!%p1138_p2), 1, %s924_s24  }
  0x4f   : > { %s1154_s12 = sshll.u32 (!%p1138_p2), %s257_s9, 3  ;;  %s258_s20 = scalar_lea.sflag (!%p1138_p2), [#allocation7], %s257_s9 }
  0x50   : > { %s261_s1 = scalar_lea.vmem (!%p1138_p2), [#allocation6], %s1154_s12 }
  0x51   : > { %891 = dma.done.wait (%p1073_p7), %s258_s20, 128  }
  0x52   : > { %893 = vsyncadd (%p1073_p7), %s258_s20, 4294967168  ;;  %s1162_s25 = sand.u32 1, %s912_s21   ;;  %p1296_p8 = scmp.ne.s32.totalorder %s1289_s23, 0 }
  0x53   : > { %s595_s17 = sshll.u32 %s1162_s25, 4  ;;  %s267_s11 = scalar_lea.sflag [#allocation10], %s1162_s25 }
  0x54   : > { %s270_s19 = scalar_lea.vmem [#allocation9], %s595_s17 }
  0x55   : > { %895 = dma.done.wait (%p1296_p8), %s267_s11, 256  }
  0x56   : > { %897 = vsyncadd (%p1296_p8), %s267_s11, 4294967040  ;;  %s596_s15 = sshll.u32 %s1162_s25, 3  ;;  %p598_p7 = scmp.ne.s32.totalorder %s932_s0, 0 }
  0x57   : > { %s1171_s7 = scalar_lea.vmem [#allocation11], %s596_s15  ;;  %s1173_s14 = scalar_lea.vmem [#allocation12], %s596_s15 }
  0x58   : > { %310 = sbr.rel (%p598_p7) target bundleno = 415 (0x19f), region = 48  ;;  %s316_s18 = sld [smem:[#allocation5]] (!%p598_p7) }
  0x5d   : > { %v311_v0 = vld [vmem:[%s270_s19] sm:$0xff]  ;;  %v599_v1 = vld [vmem:[%s1269_s3] ss:$0 sm:$0xff]  ;;  %vm352_vm0 = vcmask 7168   ;;  %v955_v9 = vmov 0.0  }
  0x5e   : > { %v312_v2 = vld [vmem:[%s270_s19 + $0x8] sm:$0xff]  ;;  %v324_v4 = vsub.f32 %v311_v0, %v599_v1  ;;  %v326_v6 = vstv %s316_s18  ;;  %362 = vst.msk [vmem:[#allocation4] sm:$0xff] %vm352_vm0, %v955_v9 }
  0x5f   : > { %v313_v3 = vadd.f32 %v312_v2, %v311_v0  ;;  %v325_v5 = vsub.f32 %v312_v2, %v599_v1 }
  0x60   : > { %v327_v7 = vmul.f32 %v326_v6, %v324_v4 }
  0x61   : > { %315 = vst [vmem:[%s1173_s14] sm:$0xff] %v313_v3  ;;  %v328_v8 = vmul.f32 %v326_v6, %v325_v5 }
  0x62   : > { %329 = vmax.xlane.f32.xlu0 %v327_v7 }
  0x66   : > { %331 = vmax.xlane.f32.xlu0 %v328_v8 }
  0xeb   : > { %v330_v10 = vpop.xlane.xlu0 %329 }
  0xec   : > { %v333_v11 = vsub.f32 %v327_v7, %v330_v10 }
  0xee   : > { %v335_v12 = vmul.f32 1.442695, %v333_v11 }
  0xef   : > { %v332_v13 = vpop.xlane.xlu0 %331 }
  0xf0   : > { %726 = vpow2.f32 %v335_v12  ;;  %v334_v14 = vsub.f32 %v328_v8, %v332_v13 }
  0xf2   : > { %v337_v15 = vmul.f32 1.442695, %v334_v14 }
  0xf4   : > { %728 = vpow2.f32 %v337_v15 }
  0xfd   : > { %v727_v16 = vpop.eup %726 }
  0xfe   : > { %339 = vadd.xlane.f32.xlu1 %v727_v16 }
 0x101   : > { %v729_v17 = vpop.eup %728 }
 0x102   : > { %341 = vadd.xlane.f32.xlu1 %v729_v17 }
 0x187   : > { %v340_v18 = vpop.xlane.xlu1 %339 }
 0x188   : > { %730 = vrcp.f32 %v340_v18 }
 0x18b   : > { %v342_v19 = vpop.xlane.xlu1 %341 }
 0x18c   : > { %732 = vrcp.f32 %v342_v19 }
 0x195   : > { %v731_v20 = vpop.eup %730 }
 0x196   : > { %v345_v21 = vmul.f32 %v731_v20, %v727_v16  ;;  %v347_v22 = vmul.f32 %v731_v20, %v340_v18 }
 0x198   : > { %351 = vst [vmem:[#allocation2 + $0x8] sm:$0xff] %v345_v21  ;;  %355 = vst.msk [vmem:[#allocation3 + $0x8] sm:$0xff] %vm352_vm0, %v347_v22 }
 0x199   : > { %v733_v23 = vpop.eup %732 }
 0x19a   : > { %v346_v24 = vmul.f32 %v733_v23, %v729_v17  ;;  %v348_v25 = vmul.f32 %v733_v23, %v342_v19 }
 0x19c   : > { %349 = vst [vmem:[#allocation2] sm:$0xff] %v346_v24  ;;  %353 = vst.msk [vmem:[#allocation3] sm:$0xff] %vm352_vm0, %v348_v25  ;;  %v356_v26 = vadd.f32 %v346_v24, %v345_v21  ;;  %v359_v27 = vadd.f32 %v348_v25, %v347_v22 }
 0x19e   : > { %358 = vst [vmem:[#allocation2 + $0x10] sm:$0xff] %v356_v26  ;;  %361 = vst.msk [vmem:[#allocation3 + $0x10] sm:$0xff] %vm352_vm0, %v359_v27 }
 0x19f PF: > { %v370_v28 = vld [vmem:[%s261_s1] sm:$0xff]  ;;  %p363_p1 = scmp.lt.s32.totalorder %s932_s0, 2  ;;  %v382_v43 = vld [vmem:[#allocation4] sm:$0xff]  ;;  %vm389_vm1 = vcmask 7168   ;;  %p601_p3 = scmp.ne.s32.totalorder %s932_s0, 3 }
 0x1a0   : > { %v371_v29 = vmul.f32 10.0, %v370_v28 }
 0x1a1   : > { %s364_s23 = scalar_select %p363_p1, %s932_s0, 2 }
 0x1a2   : > { %372 = vmax.xlane.f32.xlu0 %v371_v29 }
 0x1a3   : > { %s600_s30 = sshll.u32 %s364_s23, 3 }
 0x1a4   : > { %s366_s6 = scalar_lea.vmem [#allocation2], %s600_s30  ;;  %s368_s9 = scalar_lea.vmem [#allocation3], %s600_s30 }
 0x1a5   : > { %v367_v30 = vld [vmem:[%s366_s6] sm:$0xff] }
 0x1a6   : > { %v383_v31 = vmul.f32 %v371_v29, %v367_v30  ;;  %v369_v39 = vld [vmem:[%s368_s9] sm:$0xff] }
 0x1a8   : > { %384 = vadd.xlane.f32.xlu1 %v383_v31 }
 0x22b   : > { %v373_v32 = vpop.xlane.xlu0 %372 }
 0x22c   : > { %v374_v33 = vsub.f32 %v371_v29, %v373_v32 }
 0x22e   : > { %v375_v34 = vmul.f32 1.442695, %v374_v33 }
 0x230   : > { %734 = vpow2.f32 %v375_v34 }
 0x231   : > { %v385_v41 = vpop.xlane.xlu1 %384 }
 0x23d   : > { %v735_v35 = vpop.eup %734 }
 0x23e   : > { %377 = vadd.xlane.f32.xlu0 %v735_v35 }
 0x2c7   : > { %v378_v36 = vpop.xlane.xlu0 %377 }
 0x2c8   : > { %736 = vlog2.f32 %v378_v36 }
 0x2d5   : > { %v737_v37 = vpop.eup %736 }
 0x2d6   : > { %v380_v38 = vmul.f32 0.6931472, %v737_v37 }
 0x2d8   : > { %v381_v40 = vadd.f32 %v380_v38, %v373_v32 }
 0x2da   : > { %v386_v42 = vmul.f32 %v381_v40, %v369_v39 }
 0x2dc   : > { %v387_v44 = vsub.f32 %v385_v41, %v386_v42  ;;  %394 = sbr.rel (%p601_p3) target bundleno = 951 (0x3b7), region = 52 }
 0x2de   : > { %v388_v45 = vadd.f32 %v387_v44, %v382_v43 }
 0x2e0   : > { %390 = vst.msk [vmem:[#allocation4] sm:$0xff] %vm389_vm1, %v388_v45 }
 0x2e7   : > { %v395_v46 = vld [vmem:[#allocation4] sm:$0xff] }
 0x2e8   : > { %v396_v47 = vsel %vm389_vm1, %v395_v46, 0.0 }
 0x2e9   : > { %397 = vadd.xlane.f32.xlu0 %v396_v47 }
 0x372   : > { %v398_v48 = vpop.xlane.xlu0 %397 }
 0x373   : > { %v399_v49 = vrot.slane %v398_v48, 4 }
 0x375   : > { %v400_v50 = vadd.f32 %v399_v49, %v398_v48 }
 0x377   : > { %v401_v51 = vrot.slane %v400_v50, 2 }
 0x379   : > { %v402_v52 = vadd.f32 %v401_v51, %v400_v50 }
 0x37b   : > { %v403_v53 = vrot.slane %v402_v52, 1 }
 0x37d   : > { %v404_v54 = vadd.f32 %v403_v53, %v402_v52 }
 0x37f   : > { %608 = vpush %v404_v54 }
 0x3b0   : > { %s609_s12 = spop %608 }
 0x3b1   : > { %s406_s20 = ssub.f32 0.0, %s609_s12 }
 0x3b3   : > { %s407_s1 = smul.f32 0.0052083335, %s406_s20 }
 0x3b5   : > { %v408_v55 = vstv %s407_s1 }
 0x3b6   : > { %409 = vst [vmem:[%s1171_s7] sm:$0xff] %v408_v55 }
 0x3b7 PF: > { %s604_s0 = sshll.u32 %s936_s26, 7  ;;  %s429_s15 = sshll.u32 %s1171_s7, 4  ;;  %s430_s15 = int_to_ptr.vmem [resolvable:$true] %s429_s15 }
 0x3b8   : > { %s427_s19 = scalar_lea.hbm %s1270_s4, %s604_s0  ;;  %s411_s18 = scalar_lea.sflag [#allocation8], %s1162_s25 }
 0x3b9   : > { %s794_s8 = scalar_lea.vmem %s430_s15, 128  ;;  %p1297_p2 = scmp.ne.s32.totalorder %s1290_s10, 0 }
 0x3ba   : > { %p795_p12 = scmp.ne.s32.totalorder %s430_s15, %s794_s8  ;;  %s956_s16 = smov [#allocation11]  }
 0x3bb   : > { %s798_s23 = sshll.u32 %s956_s16, 4  ;;  %s799_s23 = int_to_ptr.vmem [resolvable:$false] %s798_s23 }
 0x3bc   : > { %p796_p13 = pnand %p795_p12, %p1297_p2  ;;  %s800_s30 = scalar_lea.vmem %s799_s23, 256 }
 0x3bd   : > { %p801_p5 = scmp.lt.s32.totalorder %s430_s15, %s799_s23  ;;  %p802_p6 = scmp.lt.s32.totalorder %s800_s30, %s794_s8 }
 0x3be   : > { %p797_p4 = pneg %p796_p13 }
 0x3bf   : > { %p803_p9 = por %p802_p6, %p801_p5 }
 0x3c1   : > { %p804_p10 = pnand %p803_p9, %p797_p4 }
 0x3c3   : > { %807 = shalt.err (!%p804_p10)
}
 0x3c4   : > { %s808_s6 = scalar_lea.hbm %s427_s19, 128  ;;  %s812_s12 = scalar_lea.hbm %s1270_s4, 512 }
 0x3c5   : > { %p809_p11 = scmp.ne.s32.totalorder %s427_s19, %s808_s6  ;;  %p813_p7 = scmp.lt.s32.totalorder %s427_s19, %s1270_s4 }
 0x3c6   : > { %p814_p1 = scmp.lt.s32.totalorder %s812_s12, %s808_s6 }
 0x3c7   : > { %p810_p0 = pnand %p809_p11, %p1297_p2 }
 0x3c8   : > { %p815_p3 = por %p814_p1, %p813_p7 }
 0x3c9   : > { %p811_p8 = pneg %p810_p0 }
 0x3cb   : > { %p816_p12 = pnand %p815_p3, %p811_p8 }
 0x3cd   : > { %819 = shalt.err (!%p816_p12)
}
 0x3ce   : > { %614 = dma.vmem_to_hbm [thread:$0]  (%p1297_p2), %s430_s15, 128, %s427_s19, %s411_s18  }
 0x3cf   : > { %s440_s8 = scalar_lea.hbm %s1271_s5, %s604_s0  ;;  %s442_s16 = sshll.u32 %s1173_s14, 4  ;;  %s443_s16 = int_to_ptr.vmem [resolvable:$true] %s442_s16 }
 0x3d0   : > { %s416_s23 = scalar_lea.sflag [#allocation13], %s1162_s25  ;;  %s820_s30 = scalar_lea.vmem %s443_s16, 128 }
 0x3d1   : > { %p821_p13 = scmp.ne.s32.totalorder %s443_s16, %s820_s30  ;;  %s957_s6 = smov [#allocation12]  }
 0x3d2   : > { %s824_s7 = sshll.u32 %s957_s6, 4  ;;  %s825_s7 = int_to_ptr.vmem [resolvable:$false] %s824_s7 }
 0x3d3   : > { %p822_p4 = pnand %p821_p13, %p1297_p2  ;;  %s826_s9 = scalar_lea.vmem %s825_s7, 256 }
 0x3d4   : > { %p827_p6 = scmp.lt.s32.totalorder %s443_s16, %s825_s7  ;;  %p828_p9 = scmp.lt.s32.totalorder %s826_s9, %s820_s30 }
 0x3d5   : > { %p823_p5 = pneg %p822_p4 }
 0x3d6   : > { %p829_p10 = por %p828_p9, %p827_p6 }
 0x3d8   : > { %p830_p11 = pnand %p829_p10, %p823_p5 }
 0x3da   : > { %833 = shalt.err (!%p830_p11)
}
 0x3db   : > { %s834_s26 = scalar_lea.hbm %s440_s8, 128  ;;  %s838_s0 = scalar_lea.hbm %s1271_s5, 512 }
 0x3dc   : > { %p835_p0 = scmp.ne.s32.totalorder %s440_s8, %s834_s26  ;;  %p839_p1 = scmp.lt.s32.totalorder %s440_s8, %s1271_s5 }
 0x3dd   : > { %p840_p3 = scmp.lt.s32.totalorder %s838_s0, %s834_s26 }
 0x3de   : > { %p836_p8 = pnand %p835_p0, %p1297_p2 }
 0x3df   : > { %p841_p12 = por %p840_p3, %p839_p1 }
 0x3e0   : > { %p837_p7 = pneg %p836_p8 }
 0x3e2   : > { %p842_p13 = pnand %p841_p12, %p837_p7 }
 0x3e4   : > { %845 = shalt.err (!%p842_p13)
}
 0x3e5   : > { %615 = dma.vmem_to_hbm [thread:$0]  (%p1297_p2), %s443_s16, 128, %s440_s8, %s416_s23  }
 0x3e6 PF: > { %s1298_s18 = sld [smem:[#allocation18_spill]]  ;;  %p633_p4 = scmp.ge.s32.totalorder %s948_s29, 2 }
 0x3e7   : > { %p1299_p5 = scmp.ne.s32.totalorder %s1291_s13, 0 }
 0x3e9   : > { %p626_p6 = pnand %p633_p4, %p1299_p5 }
 0x3eb   : > { %p627_p9 = pneg %p626_p6 }
 0x3ec   : > { %s454_s12 = sand.u32 1, %s1298_s18  }
 0x3ed   : > { %s455_s20 = scalar_lea.sflag [#allocation8], %s454_s12 }
 0x3ee   : > { %899 = dma.done.wait (%p627_p9), %s455_s20, 128  }
 0x3ef   : > { %901 = vsyncadd (%p627_p9), %s455_s20, 4294967168  ;;  %s464_s1 = scalar_lea.sflag [#allocation13], %s454_s12 }
 0x3f0   : > { %903 = dma.done.wait (%p627_p9), %s464_s1, 128  }
 0x3f1   : > { %905 = vsyncadd (%p627_p9), %s464_s1, 4294967168  ;;  %s29_s29 = sadd.s32 1, %s948_s29   ;;  %s1300_s10 = sld [smem:[#allocation22_spill]] }
 0x3f2   : > { %p26_p10 = scmp.ge.s32.totalorder %s29_s29, 18   ;;  %s1301_s17 = sld [smem:[#allocation19_spill]] }
 0x3f3   : > { %s1302_s25 = sld [smem:[#allocation23_spill]]  ;;  %s1305_s20 = smov %s912_s21 }
 0x3f4   : > { %s1303_s13 = sld [smem:[#allocation20_spill]]  ;;  %s1306_s21 = smov %s916_s22 }
 0x3f5   : > { %s1304_s11 = sld [smem:[#allocation21_spill]]  ;;  %s1308_s23 = smov %s924_s24 }
 0x3f6   : > { %s1310_s0 = smov %s940_s27  ;;  %s1311_s26 = smov %s944_s28 }
 0x3f7   : > { %s1307_s22 = smov %s1300_s10  ;;  %28 = sbr.rel (!%p26_p10) target bundleno = 16 (0x10), region = 125 }
 0x3f8   : > { %s1309_s24 = smov %s1301_s17 }
 0x3fa   : > { %s1312_s27 = smov %s1303_s13 }
 0x3fb   : > { %s1313_s28 = smov %s1304_s11 }
 0x3fc   :  { %469 = vsyncpa [#allocation7], 1 }
 0x3fd   :  { %471 = vsyncpa [#allocation7 + $0x1], 1 }
 0x3fe   :  { %472 = vsyncpa [#allocation10], 1 }
 0x3ff   :  { %474 = vsyncpa [#allocation10 + $0x1], 1 }
 0x400   :  { %475 = vsyncpa [#allocation8], 1 }
 0x401   :  { %477 = vsyncpa [#allocation8 + $0x1], 1 }
 0x402   :  { %478 = vsyncpa [#allocation13], 1 }
 0x403   :  { %480 = vsyncpa [#allocation13 + $0x1], 1 }

</bundles_post_ra>
